<compile_context>
chip_gen: v6e
topology: v6e:2x2x1
jax: 0.10.0
libtpu: 0.0.40
codegen_flags: <defaults>
</compile_context>

<pallas_src>
import math
import functools

import jax
import jax.numpy as jnp
from jax.experimental import pallas as pl
from jax.experimental.pallas import tpu as pltpu

# ----------------------------- model hyperparameters -----------------------------
B = 2          # batch
S = 8          # sequence length
D_MODEL = 32   # d_model
NHEAD = 4
HEAD_DIM = D_MODEL // NHEAD
DIM_FF = 64    # dim_feedforward
LN_EPS = 1e-5

LANES = 128


def _round_up(n, m):
    return ((n + m - 1) // m) * m


QKV_COLS = _round_up(3 * D_MODEL, LANES)   # 128 : fused q|k|v projection width (lane-dense)
FF_COLS = _round_up(DIM_FF, LANES)         # 128 : padded feed-forward hidden width


def _layernorm(x, gamma, beta, eps=LN_EPS):
    """PyTorch-style LayerNorm over the last axis (biased variance)."""
    mu = jnp.mean(x, axis=-1, keepdims=True)
    xc = x - mu
    var = jnp.mean(xc * xc, axis=-1, keepdims=True)
    return xc * jax.lax.rsqrt(var + eps) * gamma + beta


# ----------------------------- kernel -----------------------------
def encoder_layer_kernel(
    src_ref,                 # (bb*S, D)
    wqkv_ref, bqkv_ref,      # (D, QKV_COLS), (1, QKV_COLS)  -- scale folded into the q part
    wo_ref, bo_ref,          # (D, D), (1, D)
    w1_ref, b1_ref,          # (D, FF_COLS), (1, FF_COLS)
    w2_ref, b2_ref,          # (FF_COLS, D), (1, D)
    g1_ref, be1_ref,         # (1, D), (1, D)   -- norm1
    g2_ref, be2_ref,         # (1, D), (1, D)   -- norm2
    out_ref,                 # (bb*S, D)
    *, bb,                   # batch elements handled by this grid step
):
    x = src_ref[...]                                   # (bb*S, D) fp32

    # ---------------- fused Q/K/V projection: one lane-dense GEMM ----------------
    qkv = jnp.dot(x, wqkv_ref[...], preferred_element_type=jnp.float32) + bqkv_ref[...]

    # Gather (batch, head) pairs into a leading batch axis: (bb*NHEAD, S, HEAD_DIM).
    # Static slices; at these sizes each slice is sub-vreg, so the stack is cheap filler.
    def gather_heads(col0):
        return jnp.stack(
            [qkv[b * S:(b + 1) * S,
                 col0 + h * HEAD_DIM: col0 + (h + 1) * HEAD_DIM]
             for b in range(bb) for h in range(NHEAD)],
            axis=0)

    q = gather_heads(0)             # 1/sqrt(head_dim) already folded into wq/bq by the wrapper
    k = gather_heads(D_MODEL)
    v = gather_heads(2 * D_MODEL)

    # ------------- head-batched attention; contraction on last dim (no explicit k.T) -------------
    s = jnp.einsum('hqd,hkd->hqk', q, k, preferred_element_type=jnp.float32)
    s = s - jnp.max(s, axis=-1, keepdims=True)
    p = jnp.exp(s)
    p = p * pl.reciprocal(jnp.sum(p, axis=-1, keepdims=True), approx=True)
    ctx = jnp.einsum('hqk,hkd->hqd', p, v, preferred_element_type=jnp.float32)   # (bb*H, S, hd)

    # Reassemble (bb*S, D): heads back into lanes, batch elements back into rows.
    per_batch = [jnp.concatenate([ctx[b * NHEAD + h] for h in range(NHEAD)], axis=-1)
                 for b in range(bb)]
    attn = per_batch[0] if bb == 1 else jnp.concatenate(per_batch, axis=0)

    attn = jnp.dot(attn, wo_ref[...], preferred_element_type=jnp.float32) + bo_ref[...]

    # residual + norm1  (dropout1 = identity)
    x = _layernorm(x + attn, g1_ref[...], be1_ref[...])

    # ---------------- feed-forward (hidden padded to 128 lanes; exact since ReLU(0)=0) ----------------
    h1 = jnp.dot(x, w1_ref[...], preferred_element_type=jnp.float32) + b1_ref[...]
    h1 = jnp.maximum(h1, 0.0)                          # ReLU  (dropout = identity)
    h2 = jnp.dot(h1, w2_ref[...], preferred_element_type=jnp.float32) + b2_ref[...]

    # residual + norm2  (dropout2 = identity)
    x = _layernorm(x + h2, g2_ref[...], be2_ref[...])

    out_ref[...] = x.astype(out_ref.dtype)


# ----------------------------- wrapper -----------------------------
def _multi_tensorcore_chip():
    """True only for chips whose single device exposes >1 TensorCore (e.g. v7x)."""
    try:
        kind = jax.devices()[0].device_kind.lower().replace(" ", "")
    except Exception:
        return False
    return ("v7" in kind) or ("7x" in kind)


def transformer_encoder_layer(src, params):
    """src: (B, S, D) float32.  params: dict of raw (unpadded) weights."""
    Bv, Sv, Dv = src.shape
    assert (Sv, Dv) == (S, D_MODEL)

    # ---- fold the attention scale into wq/bq and fuse q|k|v into one lane-dense matrix ----
    scale = 1.0 / math.sqrt(HEAD_DIM)
    wqkv = jnp.concatenate([params["wq"] * scale, params["wk"], params["wv"]], axis=1)
    bqkv = jnp.concatenate([params["bq"] * scale, params["bk"], params["bv"]], axis=1)
    wqkv = jnp.pad(wqkv, ((0, 0), (0, QKV_COLS - 3 * D_MODEL)))
    bqkv = jnp.pad(bqkv, ((0, 0), (0, QKV_COLS - 3 * D_MODEL)))

    # ---- pad the feed-forward hidden dim to a full 128-lane tile (zeros => exact) ----
    w1 = jnp.pad(params["w1"], ((0, 0), (0, FF_COLS - DIM_FF)))
    b1 = jnp.pad(params["b1"], ((0, 0), (0, FF_COLS - DIM_FF)))
    w2 = jnp.pad(params["w2"], ((0, FF_COLS - DIM_FF), (0, 0)))

    weights = [wqkv, bqkv, params["wo"], params["bo"], w1, b1, w2, params["b2"],
               params["g1"], params["be1"], params["g2"], params["be2"]]

    # grid: one step covering the whole batch on single-TC chips (v5e/v6e);
    # one batch element per step on multi-TC chips (v7x) so both cores get work.
    multi_tc = _multi_tensorcore_chip()
    bb = 1 if multi_tc else Bv
    grid = (Bv // bb,)
    semantics = ("parallel",) if multi_tc else ("arbitrary",)

    def full_spec(arr):
        # whole (tiny) weight array resident every grid step; constant index_map so
        # Pallas does not re-DMA it across grid steps.  Weights total ~70 KiB, so
        # double-buffering them is a VMEM non-issue at this size.
        return pl.BlockSpec(arr.shape, lambda i: (0,) * arr.ndim)

    src2d = src.reshape(Bv * Sv, Dv)

    in_specs = [pl.BlockSpec((bb * S, D_MODEL), lambda i: (i, 0))]
    in_specs += [full_spec(w) for w in weights]
    out_specs = pl.BlockSpec((bb * S, D_MODEL), lambda i: (i, 0))

    out2d = pl.pallas_call(
        functools.partial(encoder_layer_kernel, bb=bb),
        out_shape=jax.ShapeDtypeStruct((Bv * Sv, D_MODEL), jnp.float32),
        grid_spec=pltpu.PrefetchScalarGridSpec(
            num_scalar_prefetch=0,
            grid=grid,
            in_specs=in_specs,
            out_specs=out_specs,
        ),
        compiler_params=pltpu.CompilerParams(dimension_semantics=semantics),
    )(src2d, *weights)

    return out2d.reshape(Bv, Sv, D_MODEL)


# ----------------------------- pure-JAX reference -----------------------------
def reference(src, p):
    def ln(x, g, b):
        mu = jnp.mean(x, -1, keepdims=True)
        var = jnp.mean((x - mu) ** 2, -1, keepdims=True)
        return (x - mu) / jnp.sqrt(var + LN_EPS) * g + b

    q = src @ p["wq"] + p["bq"]
    k = src @ p["wk"] + p["bk"]
    v = src @ p["wv"] + p["bv"]

    def split(t):  # (B,S,D) -> (B,H,S,hd)
        return t.reshape(B, S, NHEAD, HEAD_DIM).transpose(0, 2, 1, 3)

    qh, kh, vh = split(q), split(k), split(v)
    scores = jnp.einsum("bhqd,bhkd->bhqk", qh, kh) / math.sqrt(HEAD_DIM)
    probs = jax.nn.softmax(scores, axis=-1)
    o = jnp.einsum("bhqk,bhkd->bhqd", probs, vh).transpose(0, 2, 1, 3).reshape(B, S, D_MODEL)
    attn = o @ p["wo"] + p["bo"]
    x = ln(src + attn, p["g1"], p["be1"])
    ff = jnp.maximum(x @ p["w1"] + p["b1"], 0.0) @ p["w2"] + p["b2"]
    return ln(x + ff, p["g2"], p["be2"])


# ----------------------------- deterministic init -----------------------------
def init_params(key):
    ks = jax.random.split(key, 12)
    sd = 0.05
    p = {
        "wq": jax.random.normal(ks[0], (D_MODEL, D_MODEL), jnp.float32) * sd,
        "wk": jax.random.normal(ks[1], (D_MODEL, D_MODEL), jnp.float32) * sd,
        "wv": jax.random.normal(ks[2], (D_MODEL, D_MODEL), jnp.float32) * sd,
        "bq": jax.random.normal(ks[3], (1, D_MODEL), jnp.float32) * sd,
        "bk": jax.random.normal(ks[4], (1, D_MODEL), jnp.float32) * sd,
        "bv": jax.random.normal(ks[5], (1, D_MODEL), jnp.float32) * sd,
        "wo": jax.random.normal(ks[6], (D_MODEL, D_MODEL), jnp.float32) * sd,
        "bo": jax.random.normal(ks[7], (1, D_MODEL), jnp.float32) * sd,
        "w1": jax.random.normal(ks[8], (D_MODEL, DIM_FF), jnp.float32) * sd,
        "b1": jax.random.normal(ks[9], (1, DIM_FF), jnp.float32) * sd,
        "w2": jax.random.normal(ks[10], (DIM_FF, D_MODEL), jnp.float32) * sd,
        "b2": jax.random.normal(ks[11], (1, D_MODEL), jnp.float32) * sd,
        "g1": jnp.ones((1, D_MODEL), jnp.float32),
        "be1": jnp.zeros((1, D_MODEL), jnp.float32),
        "g2": jnp.ones((1, D_MODEL), jnp.float32),
        "be2": jnp.zeros((1, D_MODEL), jnp.float32),
    }
    return p


if __name__ == "__main__":
    key = jax.random.PRNGKey(0)
    k_src, k_par = jax.random.split(key)
    src = jax.random.normal(k_src, (B, S, D_MODEL), jnp.float32)
    params = init_params(k_par)

    out = transformer_encoder_layer(src, params)
    out = jax.block_until_ready(out)

    ref = reference(src, params)
    assert out.shape == (B, S, D_MODEL)
    # 1e-3 tolerance: the kernel uses the approximate EUP reciprocal for the softmax
    # denominator (pl.reciprocal(..., approx=True)); everything else is fp32-exact.
    assert jnp.allclose(out, ref, atol=1e-3, rtol=1e-3), "mismatch vs reference"

    print("KERNEL_OK")
</pallas_src>

<mosaic_0001>
module attributes {stable_mosaic.version = 11 : i64} {
  func.func @encoder_layer_kernel(%arg0: i32, %arg1: memref<16x32xf32, #tpu.memory_space<vmem>>, %arg2: memref<32x128xf32, #tpu.memory_space<vmem>>, %arg3: memref<1x128xf32, #tpu.memory_space<vmem>>, %arg4: memref<32x32xf32, #tpu.memory_space<vmem>>, %arg5: memref<1x32xf32, #tpu.memory_space<vmem>>, %arg6: memref<32x128xf32, #tpu.memory_space<vmem>>, %arg7: memref<1x128xf32, #tpu.memory_space<vmem>>, %arg8: memref<128x32xf32, #tpu.memory_space<vmem>>, %arg9: memref<1x32xf32, #tpu.memory_space<vmem>>, %arg10: memref<1x32xf32, #tpu.memory_space<vmem>>, %arg11: memref<1x32xf32, #tpu.memory_space<vmem>>, %arg12: memref<1x32xf32, #tpu.memory_space<vmem>>, %arg13: memref<1x32xf32, #tpu.memory_space<vmem>>, %arg14: memref<16x32xf32, #tpu.memory_space<vmem>>) attributes {dimension_semantics = [#tpu.dimension_semantics<arbitrary>], iteration_bounds = array<i64: 1>, scalar_prefetch = 0 : i64, scratch_operands = 0 : i64, tpu.core_type = #tpu.core_type<tc>, window_params = [{transform_indices = @transform_0, window_bounds = array<i64: 16, 32>}, {pipeline_mode = #tpu.pipeline_mode<synchronous>, transform_indices = @transform_1, window_bounds = array<i64: 32, 128>}, {pipeline_mode = #tpu.pipeline_mode<synchronous>, transform_indices = @transform_2, window_bounds = array<i64: 1, 128>}, {pipeline_mode = #tpu.pipeline_mode<synchronous>, transform_indices = @transform_3, window_bounds = array<i64: 32, 32>}, {pipeline_mode = #tpu.pipeline_mode<synchronous>, transform_indices = @transform_4, window_bounds = array<i64: 1, 32>}, {pipeline_mode = #tpu.pipeline_mode<synchronous>, transform_indices = @transform_5, window_bounds = array<i64: 32, 128>}, {pipeline_mode = #tpu.pipeline_mode<synchronous>, transform_indices = @transform_6, window_bounds = array<i64: 1, 128>}, {pipeline_mode = #tpu.pipeline_mode<synchronous>, transform_indices = @transform_7, window_bounds = array<i64: 128, 32>}, {pipeline_mode = #tpu.pipeline_mode<synchronous>, transform_indices = @transform_8, window_bounds = array<i64: 1, 32>}, {pipeline_mode = #tpu.pipeline_mode<synchronous>, transform_indices = @transform_9, window_bounds = array<i64: 1, 32>}, {pipeline_mode = #tpu.pipeline_mode<synchronous>, transform_indices = @transform_10, window_bounds = array<i64: 1, 32>}, {pipeline_mode = #tpu.pipeline_mode<synchronous>, transform_indices = @transform_11, window_bounds = array<i64: 1, 32>}, {pipeline_mode = #tpu.pipeline_mode<synchronous>, transform_indices = @transform_12, window_bounds = array<i64: 1, 32>}, {transform_indices = @transform_13, window_bounds = array<i64: 16, 32>}]} {
    %c0 = arith.constant 0 : index
    %c0_0 = arith.constant 0 : index
    %0 = vector.load %arg1[%c0, %c0_0] : memref<16x32xf32, #tpu.memory_space<vmem>>, vector<16x32xf32>
    %c0_1 = arith.constant 0 : index
    %c0_2 = arith.constant 0 : index
    %1 = vector.load %arg2[%c0_1, %c0_2] : memref<32x128xf32, #tpu.memory_space<vmem>>, vector<32x128xf32>
    %cst = arith.constant dense<0.000000e+00> : vector<16x128xf32>
    %2 = tpu.matmul %0, %1, %cst {dimension_numbers = #tpu.dot_dimension_numbers<[1], [0], [0], [1], [0, 0, 1, 1], [], []>} : vector<16x32xf32>, vector<32x128xf32>, vector<16x128xf32> -> vector<16x128xf32>
    %c0_3 = arith.constant 0 : index
    %c0_4 = arith.constant 0 : index
    %3 = vector.load %arg3[%c0_3, %c0_4] : memref<1x128xf32, #tpu.memory_space<vmem>>, vector<1x128xf32>
    %4 = vector.broadcast %3 : vector<1x128xf32> to vector<16x128xf32>
    %5 = arith.addf %2, %4 : vector<16x128xf32>
    %6 = vector.extract_strided_slice %5 {offsets = [0, 0], sizes = [8, 8], strides = [1, 1]} : vector<16x128xf32> to vector<8x8xf32>
    %7 = vector.extract_strided_slice %5 {offsets = [0, 8], sizes = [8, 8], strides = [1, 1]} : vector<16x128xf32> to vector<8x8xf32>
    %8 = vector.extract_strided_slice %5 {offsets = [0, 16], sizes = [8, 8], strides = [1, 1]} : vector<16x128xf32> to vector<8x8xf32>
    %9 = vector.extract_strided_slice %5 {offsets = [0, 24], sizes = [8, 8], strides = [1, 1]} : vector<16x128xf32> to vector<8x8xf32>
    %10 = vector.extract_strided_slice %5 {offsets = [8, 0], sizes = [8, 8], strides = [1, 1]} : vector<16x128xf32> to vector<8x8xf32>
    %11 = vector.extract_strided_slice %5 {offsets = [8, 8], sizes = [8, 8], strides = [1, 1]} : vector<16x128xf32> to vector<8x8xf32>
    %12 = vector.extract_strided_slice %5 {offsets = [8, 16], sizes = [8, 8], strides = [1, 1]} : vector<16x128xf32> to vector<8x8xf32>
    %13 = vector.extract_strided_slice %5 {offsets = [8, 24], sizes = [8, 8], strides = [1, 1]} : vector<16x128xf32> to vector<8x8xf32>
    %14 = vector.shape_cast %6 : vector<8x8xf32> to vector<1x8x8xf32>
    %15 = vector.shape_cast %7 : vector<8x8xf32> to vector<1x8x8xf32>
    %16 = vector.shape_cast %8 : vector<8x8xf32> to vector<1x8x8xf32>
    %17 = vector.shape_cast %9 : vector<8x8xf32> to vector<1x8x8xf32>
    %18 = vector.shape_cast %10 : vector<8x8xf32> to vector<1x8x8xf32>
    %19 = vector.shape_cast %11 : vector<8x8xf32> to vector<1x8x8xf32>
    %20 = vector.shape_cast %12 : vector<8x8xf32> to vector<1x8x8xf32>
    %21 = vector.shape_cast %13 : vector<8x8xf32> to vector<1x8x8xf32>
    %22 = tpu.concatenate %14, %15, %16, %17, %18, %19, %20, %21 in 0 : vector<1x8x8xf32>, vector<1x8x8xf32>, vector<1x8x8xf32>, vector<1x8x8xf32>, vector<1x8x8xf32>, vector<1x8x8xf32>, vector<1x8x8xf32>, vector<1x8x8xf32> -> vector<8x8x8xf32>
    %23 = vector.extract_strided_slice %5 {offsets = [0, 32], sizes = [8, 8], strides = [1, 1]} : vector<16x128xf32> to vector<8x8xf32>
    %24 = vector.extract_strided_slice %5 {offsets = [0, 40], sizes = [8, 8], strides = [1, 1]} : vector<16x128xf32> to vector<8x8xf32>
    %25 = vector.extract_strided_slice %5 {offsets = [0, 48], sizes = [8, 8], strides = [1, 1]} : vector<16x128xf32> to vector<8x8xf32>
    %26 = vector.extract_strided_slice %5 {offsets = [0, 56], sizes = [8, 8], strides = [1, 1]} : vector<16x128xf32> to vector<8x8xf32>
    %27 = vector.extract_strided_slice %5 {offsets = [8, 32], sizes = [8, 8], strides = [1, 1]} : vector<16x128xf32> to vector<8x8xf32>
    %28 = vector.extract_strided_slice %5 {offsets = [8, 40], sizes = [8, 8], strides = [1, 1]} : vector<16x128xf32> to vector<8x8xf32>
    %29 = vector.extract_strided_slice %5 {offsets = [8, 48], sizes = [8, 8], strides = [1, 1]} : vector<16x128xf32> to vector<8x8xf32>
    %30 = vector.extract_strided_slice %5 {offsets = [8, 56], sizes = [8, 8], strides = [1, 1]} : vector<16x128xf32> to vector<8x8xf32>
    %31 = vector.shape_cast %23 : vector<8x8xf32> to vector<1x8x8xf32>
    %32 = vector.shape_cast %24 : vector<8x8xf32> to vector<1x8x8xf32>
    %33 = vector.shape_cast %25 : vector<8x8xf32> to vector<1x8x8xf32>
    %34 = vector.shape_cast %26 : vector<8x8xf32> to vector<1x8x8xf32>
    %35 = vector.shape_cast %27 : vector<8x8xf32> to vector<1x8x8xf32>
    %36 = vector.shape_cast %28 : vector<8x8xf32> to vector<1x8x8xf32>
    %37 = vector.shape_cast %29 : vector<8x8xf32> to vector<1x8x8xf32>
    %38 = vector.shape_cast %30 : vector<8x8xf32> to vector<1x8x8xf32>
    %39 = tpu.concatenate %31, %32, %33, %34, %35, %36, %37, %38 in 0 : vector<1x8x8xf32>, vector<1x8x8xf32>, vector<1x8x8xf32>, vector<1x8x8xf32>, vector<1x8x8xf32>, vector<1x8x8xf32>, vector<1x8x8xf32>, vector<1x8x8xf32> -> vector<8x8x8xf32>
    %40 = vector.extract_strided_slice %5 {offsets = [0, 64], sizes = [8, 8], strides = [1, 1]} : vector<16x128xf32> to vector<8x8xf32>
    %41 = vector.extract_strided_slice %5 {offsets = [0, 72], sizes = [8, 8], strides = [1, 1]} : vector<16x128xf32> to vector<8x8xf32>
    %42 = vector.extract_strided_slice %5 {offsets = [0, 80], sizes = [8, 8], strides = [1, 1]} : vector<16x128xf32> to vector<8x8xf32>
    %43 = vector.extract_strided_slice %5 {offsets = [0, 88], sizes = [8, 8], strides = [1, 1]} : vector<16x128xf32> to vector<8x8xf32>
    %44 = vector.extract_strided_slice %5 {offsets = [8, 64], sizes = [8, 8], strides = [1, 1]} : vector<16x128xf32> to vector<8x8xf32>
    %45 = vector.extract_strided_slice %5 {offsets = [8, 72], sizes = [8, 8], strides = [1, 1]} : vector<16x128xf32> to vector<8x8xf32>
    %46 = vector.extract_strided_slice %5 {offsets = [8, 80], sizes = [8, 8], strides = [1, 1]} : vector<16x128xf32> to vector<8x8xf32>
    %47 = vector.extract_strided_slice %5 {offsets = [8, 88], sizes = [8, 8], strides = [1, 1]} : vector<16x128xf32> to vector<8x8xf32>
    %48 = vector.shape_cast %40 : vector<8x8xf32> to vector<1x8x8xf32>
    %49 = vector.shape_cast %41 : vector<8x8xf32> to vector<1x8x8xf32>
    %50 = vector.shape_cast %42 : vector<8x8xf32> to vector<1x8x8xf32>
    %51 = vector.shape_cast %43 : vector<8x8xf32> to vector<1x8x8xf32>
    %52 = vector.shape_cast %44 : vector<8x8xf32> to vector<1x8x8xf32>
    %53 = vector.shape_cast %45 : vector<8x8xf32> to vector<1x8x8xf32>
    %54 = vector.shape_cast %46 : vector<8x8xf32> to vector<1x8x8xf32>
    %55 = vector.shape_cast %47 : vector<8x8xf32> to vector<1x8x8xf32>
    %56 = tpu.concatenate %48, %49, %50, %51, %52, %53, %54, %55 in 0 : vector<1x8x8xf32>, vector<1x8x8xf32>, vector<1x8x8xf32>, vector<1x8x8xf32>, vector<1x8x8xf32>, vector<1x8x8xf32>, vector<1x8x8xf32>, vector<1x8x8xf32> -> vector<8x8x8xf32>
    "tpu.trace_start"() <{level = 10 : i32, message = "hqd,hkd->hqk"}> : () -> ()
    %cst_5 = arith.constant dense<0.000000e+00> : vector<8x8x8xf32>
    %57 = tpu.matmul %22, %39, %cst_5 {dimension_numbers = #tpu.dot_dimension_numbers<[2], [2], [1], [1], [0, 0, 0, 1, 1, 1], [0], [0]>} : vector<8x8x8xf32>, vector<8x8x8xf32>, vector<8x8x8xf32> -> vector<8x8x8xf32>
    "tpu.trace_stop"() : () -> ()
    %cst_6 = arith.constant dense<0xFF800000> : vector<8x8xf32>
    %58 = vector.multi_reduction <maximumf>, %57, %cst_6 [2] : vector<8x8x8xf32> to vector<8x8xf32>
    %59 = vector.shape_cast %58 : vector<8x8xf32> to vector<8x8x1xf32>
    %60 = vector.broadcast %59 : vector<8x8x1xf32> to vector<8x8x8xf32>
    %61 = arith.subf %57, %60 : vector<8x8x8xf32>
    %62 = math.exp %61 : vector<8x8x8xf32>
    %cst_7 = arith.constant dense<0.000000e+00> : vector<8x8xf32>
    %63 = vector.multi_reduction <add>, %62, %cst_7 [2] : vector<8x8x8xf32> to vector<8x8xf32>
    %64 = vector.shape_cast %63 : vector<8x8xf32> to vector<8x8x1xf32>
    %65 = tpu.reciprocal %64 {approx = true} : vector<8x8x1xf32> -> vector<8x8x1xf32>
    %66 = vector.broadcast %65 : vector<8x8x1xf32> to vector<8x8x8xf32>
    %67 = arith.mulf %62, %66 : vector<8x8x8xf32>
    "tpu.trace_start"() <{level = 10 : i32, message = "hqk,hkd->hqd"}> : () -> ()
    %cst_8 = arith.constant dense<0.000000e+00> : vector<8x8x8xf32>
    %68 = tpu.matmul %67, %56, %cst_8 {dimension_numbers = #tpu.dot_dimension_numbers<[2], [1], [1], [2], [0, 0, 0, 1, 1, 2], [0], [0]>} : vector<8x8x8xf32>, vector<8x8x8xf32>, vector<8x8x8xf32> -> vector<8x8x8xf32>
    "tpu.trace_stop"() : () -> ()
    %69 = vector.extract_strided_slice %68 {offsets = [0, 0, 0], sizes = [1, 8, 8], strides = [1, 1, 1]} : vector<8x8x8xf32> to vector<1x8x8xf32>
    %70 = vector.shape_cast %69 : vector<1x8x8xf32> to vector<8x8xf32>
    %71 = vector.extract_strided_slice %68 {offsets = [1, 0, 0], sizes = [1, 8, 8], strides = [1, 1, 1]} : vector<8x8x8xf32> to vector<1x8x8xf32>
    %72 = vector.shape_cast %71 : vector<1x8x8xf32> to vector<8x8xf32>
    %73 = vector.extract_strided_slice %68 {offsets = [2, 0, 0], sizes = [1, 8, 8], strides = [1, 1, 1]} : vector<8x8x8xf32> to vector<1x8x8xf32>
    %74 = vector.shape_cast %73 : vector<1x8x8xf32> to vector<8x8xf32>
    %75 = vector.extract_strided_slice %68 {offsets = [3, 0, 0], sizes = [1, 8, 8], strides = [1, 1, 1]} : vector<8x8x8xf32> to vector<1x8x8xf32>
    %76 = vector.shape_cast %75 : vector<1x8x8xf32> to vector<8x8xf32>
    %77 = tpu.concatenate %70, %72, %74, %76 in 1 : vector<8x8xf32>, vector<8x8xf32>, vector<8x8xf32>, vector<8x8xf32> -> vector<8x32xf32>
    %78 = vector.extract_strided_slice %68 {offsets = [4, 0, 0], sizes = [1, 8, 8], strides = [1, 1, 1]} : vector<8x8x8xf32> to vector<1x8x8xf32>
    %79 = vector.shape_cast %78 : vector<1x8x8xf32> to vector<8x8xf32>
    %80 = vector.extract_strided_slice %68 {offsets = [5, 0, 0], sizes = [1, 8, 8], strides = [1, 1, 1]} : vector<8x8x8xf32> to vector<1x8x8xf32>
    %81 = vector.shape_cast %80 : vector<1x8x8xf32> to vector<8x8xf32>
    %82 = vector.extract_strided_slice %68 {offsets = [6, 0, 0], sizes = [1, 8, 8], strides = [1, 1, 1]} : vector<8x8x8xf32> to vector<1x8x8xf32>
    %83 = vector.shape_cast %82 : vector<1x8x8xf32> to vector<8x8xf32>
    %84 = vector.extract_strided_slice %68 {offsets = [7, 0, 0], sizes = [1, 8, 8], strides = [1, 1, 1]} : vector<8x8x8xf32> to vector<1x8x8xf32>
    %85 = vector.shape_cast %84 : vector<1x8x8xf32> to vector<8x8xf32>
    %86 = tpu.concatenate %79, %81, %83, %85 in 1 : vector<8x8xf32>, vector<8x8xf32>, vector<8x8xf32>, vector<8x8xf32> -> vector<8x32xf32>
    %87 = tpu.concatenate %77, %86 in 0 : vector<8x32xf32>, vector<8x32xf32> -> vector<16x32xf32>
    %c0_9 = arith.constant 0 : index
    %c0_10 = arith.constant 0 : index
    %88 = vector.load %arg4[%c0_9, %c0_10] : memref<32x32xf32, #tpu.memory_space<vmem>>, vector<32x32xf32>
    %cst_11 = arith.constant dense<0.000000e+00> : vector<16x32xf32>
    %89 = tpu.matmul %87, %88, %cst_11 {dimension_numbers = #tpu.dot_dimension_numbers<[1], [0], [0], [1], [0, 0, 1, 1], [], []>} : vector<16x32xf32>, vector<32x32xf32>, vector<16x32xf32> -> vector<16x32xf32>
    %c0_12 = arith.constant 0 : index
    %c0_13 = arith.constant 0 : index
    %90 = vector.load %arg5[%c0_12, %c0_13] : memref<1x32xf32, #tpu.memory_space<vmem>>, vector<1x32xf32>
    %91 = vector.broadcast %90 : vector<1x32xf32> to vector<16x32xf32>
    %92 = arith.addf %89, %91 : vector<16x32xf32>
    %93 = arith.addf %0, %92 : vector<16x32xf32>
    %c0_14 = arith.constant 0 : index
    %c0_15 = arith.constant 0 : index
    %94 = vector.load %arg10[%c0_14, %c0_15] : memref<1x32xf32, #tpu.memory_space<vmem>>, vector<1x32xf32>
    %c0_16 = arith.constant 0 : index
    %c0_17 = arith.constant 0 : index
    %95 = vector.load %arg11[%c0_16, %c0_17] : memref<1x32xf32, #tpu.memory_space<vmem>>, vector<1x32xf32>
    %cst_18 = arith.constant dense<0.000000e+00> : vector<16xf32>
    %96 = vector.multi_reduction <add>, %93, %cst_18 [1] : vector<16x32xf32> to vector<16xf32>
    %97 = vector.shape_cast %96 : vector<16xf32> to vector<16x1xf32>
    %cst_19 = arith.constant 3.200000e+01 : f32
    %98 = vector.broadcast %cst_19 : f32 to vector<16x1xf32>
    %99 = arith.divf %97, %98 : vector<16x1xf32>
    %100 = vector.broadcast %99 : vector<16x1xf32> to vector<16x32xf32>
    %101 = arith.subf %93, %100 : vector<16x32xf32>
    %102 = arith.mulf %101, %101 : vector<16x32xf32>
    %cst_20 = arith.constant dense<0.000000e+00> : vector<16xf32>
    %103 = vector.multi_reduction <add>, %102, %cst_20 [1] : vector<16x32xf32> to vector<16xf32>
    %104 = vector.shape_cast %103 : vector<16xf32> to vector<16x1xf32>
    %cst_21 = arith.constant 3.200000e+01 : f32
    %105 = vector.broadcast %cst_21 : f32 to vector<16x1xf32>
    %106 = arith.divf %104, %105 : vector<16x1xf32>
    %cst_22 = arith.constant 9.99999974E-6 : f32
    %107 = vector.broadcast %cst_22 : f32 to vector<16x1xf32>
    %108 = arith.addf %106, %107 : vector<16x1xf32>
    %109 = math.rsqrt %108 : vector<16x1xf32>
    %110 = vector.broadcast %109 : vector<16x1xf32> to vector<16x32xf32>
    %111 = arith.mulf %101, %110 : vector<16x32xf32>
    %112 = vector.broadcast %94 : vector<1x32xf32> to vector<16x32xf32>
    %113 = arith.mulf %111, %112 : vector<16x32xf32>
    %114 = vector.broadcast %95 : vector<1x32xf32> to vector<16x32xf32>
    %115 = arith.addf %113, %114 : vector<16x32xf32>
    %c0_23 = arith.constant 0 : index
    %c0_24 = arith.constant 0 : index
    %116 = vector.load %arg6[%c0_23, %c0_24] : memref<32x128xf32, #tpu.memory_space<vmem>>, vector<32x128xf32>
    %cst_25 = arith.constant dense<0.000000e+00> : vector<16x128xf32>
    %117 = tpu.matmul %115, %116, %cst_25 {dimension_numbers = #tpu.dot_dimension_numbers<[1], [0], [0], [1], [0, 0, 1, 1], [], []>} : vector<16x32xf32>, vector<32x128xf32>, vector<16x128xf32> -> vector<16x128xf32>
    %c0_26 = arith.constant 0 : index
    %c0_27 = arith.constant 0 : index
    %118 = vector.load %arg7[%c0_26, %c0_27] : memref<1x128xf32, #tpu.memory_space<vmem>>, vector<1x128xf32>
    %119 = vector.broadcast %118 : vector<1x128xf32> to vector<16x128xf32>
    %120 = arith.addf %117, %119 : vector<16x128xf32>
    %cst_28 = arith.constant 0.000000e+00 : f32
    %121 = vector.broadcast %cst_28 : f32 to vector<16x128xf32>
    %122 = arith.maximumf %120, %121 : vector<16x128xf32>
    %c0_29 = arith.constant 0 : index
    %c0_30 = arith.constant 0 : index
    %123 = vector.load %arg8[%c0_29, %c0_30] : memref<128x32xf32, #tpu.memory_space<vmem>>, vector<128x32xf32>
    %cst_31 = arith.constant dense<0.000000e+00> : vector<16x32xf32>
    %124 = tpu.matmul %122, %123, %cst_31 {dimension_numbers = #tpu.dot_dimension_numbers<[1], [0], [0], [1], [0, 0, 1, 1], [], []>} : vector<16x128xf32>, vector<128x32xf32>, vector<16x32xf32> -> vector<16x32xf32>
    %c0_32 = arith.constant 0 : index
    %c0_33 = arith.constant 0 : index
    %125 = vector.load %arg9[%c0_32, %c0_33] : memref<1x32xf32, #tpu.memory_space<vmem>>, vector<1x32xf32>
    %126 = vector.broadcast %125 : vector<1x32xf32> to vector<16x32xf32>
    %127 = arith.addf %124, %126 : vector<16x32xf32>
    %128 = arith.addf %115, %127 : vector<16x32xf32>
    %c0_34 = arith.constant 0 : index
    %c0_35 = arith.constant 0 : index
    %129 = vector.load %arg12[%c0_34, %c0_35] : memref<1x32xf32, #tpu.memory_space<vmem>>, vector<1x32xf32>
    %c0_36 = arith.constant 0 : index
    %c0_37 = arith.constant 0 : index
    %130 = vector.load %arg13[%c0_36, %c0_37] : memref<1x32xf32, #tpu.memory_space<vmem>>, vector<1x32xf32>
    %cst_38 = arith.constant dense<0.000000e+00> : vector<16xf32>
    %131 = vector.multi_reduction <add>, %128, %cst_38 [1] : vector<16x32xf32> to vector<16xf32>
    %132 = vector.shape_cast %131 : vector<16xf32> to vector<16x1xf32>
    %cst_39 = arith.constant 3.200000e+01 : f32
    %133 = vector.broadcast %cst_39 : f32 to vector<16x1xf32>
    %134 = arith.divf %132, %133 : vector<16x1xf32>
    %135 = vector.broadcast %134 : vector<16x1xf32> to vector<16x32xf32>
    %136 = arith.subf %128, %135 : vector<16x32xf32>
    %137 = arith.mulf %136, %136 : vector<16x32xf32>
    %cst_40 = arith.constant dense<0.000000e+00> : vector<16xf32>
    %138 = vector.multi_reduction <add>, %137, %cst_40 [1] : vector<16x32xf32> to vector<16xf32>
    %139 = vector.shape_cast %138 : vector<16xf32> to vector<16x1xf32>
    %cst_41 = arith.constant 3.200000e+01 : f32
    %140 = vector.broadcast %cst_41 : f32 to vector<16x1xf32>
    %141 = arith.divf %139, %140 : vector<16x1xf32>
    %cst_42 = arith.constant 9.99999974E-6 : f32
    %142 = vector.broadcast %cst_42 : f32 to vector<16x1xf32>
    %143 = arith.addf %141, %142 : vector<16x1xf32>
    %144 = math.rsqrt %143 : vector<16x1xf32>
    %145 = vector.broadcast %144 : vector<16x1xf32> to vector<16x32xf32>
    %146 = arith.mulf %136, %145 : vector<16x32xf32>
    %147 = vector.broadcast %129 : vector<1x32xf32> to vector<16x32xf32>
    %148 = arith.mulf %146, %147 : vector<16x32xf32>
    %149 = vector.broadcast %130 : vector<1x32xf32> to vector<16x32xf32>
    %150 = arith.addf %148, %149 : vector<16x32xf32>
    %c0_43 = arith.constant 0 : index
    %c0_44 = arith.constant 0 : index
    %151 = vector.load %arg14[%c0_43, %c0_44] : memref<16x32xf32, #tpu.memory_space<vmem>>, vector<16x32xf32>
    tpu.vector_store %arg14[%c0_43, %c0_44], %150 {strides = array<i32>} : memref<16x32xf32, #tpu.memory_space<vmem>>, vector<16x32xf32>,
    return
  }
  func.func @transform_0(%arg0: i32) -> (i32, i32) {
    %c0_i32 = arith.constant 0 : i32
    %c0_i32_0 = arith.constant 0 : i32
    return %arg0, %c0_i32 : i32, i32
  }
  func.func @transform_1(%arg0: i32) -> (i32, i32) {
    %c0_i32 = arith.constant 0 : i32
    %c0_i32_0 = arith.constant 0 : i32
    %c0_i32_1 = arith.constant 0 : i32
    return %c0_i32, %c0_i32_0 : i32, i32
  }
  func.func @transform_2(%arg0: i32) -> (i32, i32) {
    %c0_i32 = arith.constant 0 : i32
    %c0_i32_0 = arith.constant 0 : i32
    %c0_i32_1 = arith.constant 0 : i32
    return %c0_i32, %c0_i32_0 : i32, i32
  }
  func.func @transform_3(%arg0: i32) -> (i32, i32) {
    %c0_i32 = arith.constant 0 : i32
    %c0_i32_0 = arith.constant 0 : i32
    %c0_i32_1 = arith.constant 0 : i32
    return %c0_i32, %c0_i32_0 : i32, i32
  }
  func.func @transform_4(%arg0: i32) -> (i32, i32) {
    %c0_i32 = arith.constant 0 : i32
    %c0_i32_0 = arith.constant 0 : i32
    %c0_i32_1 = arith.constant 0 : i32
    return %c0_i32, %c0_i32_0 : i32, i32
  }
  func.func @transform_5(%arg0: i32) -> (i32, i32) {
    %c0_i32 = arith.constant 0 : i32
    %c0_i32_0 = arith.constant 0 : i32
    %c0_i32_1 = arith.constant 0 : i32
    return %c0_i32, %c0_i32_0 : i32, i32
  }
  func.func @transform_6(%arg0: i32) -> (i32, i32) {
    %c0_i32 = arith.constant 0 : i32
    %c0_i32_0 = arith.constant 0 : i32
    %c0_i32_1 = arith.constant 0 : i32
    return %c0_i32, %c0_i32_0 : i32, i32
  }
  func.func @transform_7(%arg0: i32) -> (i32, i32) {
    %c0_i32 = arith.constant 0 : i32
    %c0_i32_0 = arith.constant 0 : i32
    %c0_i32_1 = arith.constant 0 : i32
    return %c0_i32, %c0_i32_0 : i32, i32
  }
  func.func @transform_8(%arg0: i32) -> (i32, i32) {
    %c0_i32 = arith.constant 0 : i32
    %c0_i32_0 = arith.constant 0 : i32
    %c0_i32_1 = arith.constant 0 : i32
    return %c0_i32, %c0_i32_0 : i32, i32
  }
  func.func @transform_9(%arg0: i32) -> (i32, i32) {
    %c0_i32 = arith.constant 0 : i32
    %c0_i32_0 = arith.constant 0 : i32
    %c0_i32_1 = arith.constant 0 : i32
    return %c0_i32, %c0_i32_0 : i32, i32
  }
  func.func @transform_10(%arg0: i32) -> (i32, i32) {
    %c0_i32 = arith.constant 0 : i32
    %c0_i32_0 = arith.constant 0 : i32
    %c0_i32_1 = arith.constant 0 : i32
    return %c0_i32, %c0_i32_0 : i32, i32
  }
  func.func @transform_11(%arg0: i32) -> (i32, i32) {
    %c0_i32 = arith.constant 0 : i32
    %c0_i32_0 = arith.constant 0 : i32
    %c0_i32_1 = arith.constant 0 : i32
    return %c0_i32, %c0_i32_0 : i32, i32
  }
  func.func @transform_12(%arg0: i32) -> (i32, i32) {
    %c0_i32 = arith.constant 0 : i32
    %c0_i32_0 = arith.constant 0 : i32
    %c0_i32_1 = arith.constant 0 : i32
    return %c0_i32, %c0_i32_0 : i32, i32
  }
  func.func @transform_13(%arg0: i32) -> (i32, i32) {
    %c0_i32 = arith.constant 0 : i32
    %c0_i32_0 = arith.constant 0 : i32
    return %arg0, %c0_i32 : i32, i32
  }
}

</mosaic_0001>

<bundles_post_ra>
// kernel: tpu_custom_call.1
= control target key start
LH: loop header
LB: loop body
LE: loop exit
PB: predicated region body
PF: predicated region fallthrough
CT: control target
= control target key end

     0   :  { %vm58_vm0 = vcmask 261120   ;;  %s2606_s0 = inlined_call_operand.vmem [shape: f32[16,32], index: 0, kind: input, shape index: {}]   ;;  %s2607_s1 = inlined_call_operand.vmem [shape: f32[32,128], index: 1, kind: input, shape index: {}]   ;;  %s2608_s2 = inlined_call_operand.vmem [shape: f32[1,128], index: 2, kind: input, shape index: {}]   ;;  %s2609_s3 = inlined_call_operand.vmem [shape: f32[32,32], index: 3, kind: input, shape index: {}]   ;;  %s2610_s4 = inlined_call_operand.vmem [shape: f32[1,32], index: 4, kind: input, shape index: {}]   ;;  %s2611_s5 = inlined_call_operand.vmem [shape: f32[32,128], index: 5, kind: input, shape index: {}]   ;;  %s2612_s6 = inlined_call_operand.vmem [shape: f32[1,128], index: 6, kind: input, shape index: {}]   ;;  %s2613_s7 = inlined_call_operand.vmem [shape: f32[128,32], index: 7, kind: input, shape index: {}]   ;;  %s2614_s8 = inlined_call_operand.vmem [shape: f32[1,32], index: 8, kind: input, shape index: {}]   ;;  %s2615_s9 = inlined_call_operand.vmem [shape: f32[1,32], index: 9, kind: input, shape index: {}]   ;;  %s2616_s10 = inlined_call_operand.vmem [shape: f32[1,32], index: 10, kind: input, shape index: {}]   ;;  %s2617_s11 = inlined_call_operand.vmem [shape: f32[1,32], index: 11, kind: input, shape index: {}]   ;;  %s2618_s12 = inlined_call_operand.vmem [shape: f32[1,32], index: 12, kind: input, shape index: {}]   ;;  %s2619_s13 = inlined_call_operand.hbm [shape: f32[16,32], index: 13, kind: output, shape index: {}]  }
   0x1   :  { %v50_v0 = vld [vmem:[%s2607_s1 + $0x18] sm:$0xff]  ;;  %v49_v1 = vld [vmem:[%s2607_s1 + $0x10] sm:$0xff]  ;;  %v2305_v2 = vld [vmem:[%s2606_s0] sm:$0xff] }
   0x2   :  { %1992 = vmatprep.subr.mxu1 %v50_v0  ;;  %v48_v3 = vld [vmem:[%s2607_s1 + $0x8] sm:$0xff]  ;;  %2000 = vmatprep.mubr.msk.f32.mxu1 %vm58_vm0, %v2305_v2 }
   0x3   :  { %1993 = vmatpush3.msra.mxu1 %v50_v0 }
   0x4   :  { %18 = vsyncpa [#allocation3], 0  ;;  %1994 = vmatprep.subr.mxu1 %v49_v1  ;;  %v47_v4 = vld [vmem:[%s2607_s1] sm:$0xff]  ;;  %v2318_v5 = vld [vmem:[%s2606_s0 + $0x8] sm:$0xff]  ;;  %v2214_v7 = vmov 0.0   ;;  %s2215_s0 = smov 104  }
   0x5   :  { %1995 = vmatpush3.msra.mxu1 %v49_v1  ;;  %2013 = vmatprep.subr.mxu0 %v2214_v7  ;;  %v1886_v8 = vld [vmem:[%s2608_s2] ss:$0 sm:$0xff]  ;;  %s2216_s21 = smov 120   ;;  %vm2217_vm1 = vmmov 0   ;;  %s2218_s2 = smov 112   ;;  %vm156_vm2 = vcmask 64512  }
   0x6   :  { %1996 = vmatprep.subr.mxu1 %v48_v3  ;;  %2015 = vmatprep.mubr.msk.f32.mxu0 %vm2217_vm1, %v2214_v7  ;;  %s2219_s22 = smov 96   ;;  %s2220_s23 = smov 64   ;;  %vm1472_vm3 = vcmask 130048   ;;  %vm1474_vm4 = vcmask 195584  }
   0x7   :  { %1997 = vmatpush3.msra.mxu1 %v48_v3  ;;  %s2221_s26 = smov 8   ;;  %s2222_s14 = smov 16  }
   0x8   :  { %1998 = vmatprep.subr.mxu1 %v47_v4  ;;  %s2223_s17 = smov 24   ;;  %s2224_s1 = smov [#allocation2]  }
   0x9   :  { %1999 = vmatpush3.msra.mxu1 %v47_v4 }
   0xa   :  { %2001 = vmatmul.mubr.msk.f32.vlgmr.msra.gmra.mxu1 %vm58_vm0, %v2318_v5  ;;  %2003 = vmatprep.subr.mxu1 %v2214_v7 }
   0xb   :  { %2005 = vmatprep.mubr.msk.f32.mxu1 %vm2217_vm1, %v2214_v7 }
  0xca   :  { %v2002_v6 = vpop.f32.mrf.mxu1 }
  0xcb   :  { %v2335_v11 = vadd.f32 %v2002_v6, %v1886_v8 }
  0xcc   :  { %v131_v9 = vpop.f32.mrf.mxu1 }
  0xcd   :  { %v2327_v10 = vadd.f32 %v1886_v8, %v131_v9 }
  0xcf   :  { %145 = vrot.lane.b32.xlu1 %v2327_v10, %s2215_s0  ;;  %141 = vrot.lane.b32.xlu0 %v2327_v10, %s2216_s21 }
  0xd3   :  { %148 = vrot.lane.b32.xlu1 %v2335_v11, %s2216_s21  ;;  %143 = vrot.lane.b32.xlu0 %v2327_v10, %s2218_s2 }
  0xd7   :  { %152 = vrot.lane.b32.xlu1 %v2335_v11, %s2215_s0  ;;  %150 = vrot.lane.b32.xlu0 %v2335_v11, %s2218_s2  ;;  %s1875_s0 = sshll.u32 %s2224_s1, 4  ;;  %s1876_s0 = int_to_ptr.vmem [resolvable:$true] %s1875_s0 }
  0xd8   :  { %s2192_s21 = scalar_lea.vmem %s1876_s0, 256  ;;  %p2197_p1 = scmp.lt.s32.totalorder %s1876_s0, %s1876_s0 }
  0xd9   :  { %p2193_p0 = scmp.ne.s32.totalorder %s1876_s0, %s2192_s21  ;;  %p2198_p2 = scmp.lt.s32.totalorder %s2192_s21, %s2192_s21 }
  0xdb   :  { %154 = vrot.lane.b32.xlu0 %v2327_v10, %s2219_s22  ;;  %p2199_p3 = por %p2198_p2, %p2197_p1 }
  0xdd   :  { %p2200_p4 = pnand %p2199_p3, %p2193_p0 }
 0x141   :  { %v2342_v12 = vpop.permute.xlu1 %145  ;;  %v2344_v13 = vpop.permute.xlu0 %141 }
 0x142   :  { %231 = vrot.lane.b32.xlu1 %v2344_v13, %s2219_s22 }
 0x145   :  { %v2347_v14 = vpop.permute.xlu0 %143  ;;  %v2351_v15 = vpop.permute.xlu1 %148 }
 0x146   :  { %383 = vrot.lane.b32.xlu1 %v2342_v12, %s2219_s22  ;;  %307 = vrot.lane.b32.xlu0 %v2347_v14, %s2219_s22 }
 0x149   :  { %v2353_v16 = vpop.permute.xlu0 %150  ;;  %v2357_v17 = vpop.permute.xlu1 %152 }
 0x14a   :  { %535 = vrot.lane.b32.xlu1 %v2351_v15, %s2219_s22  ;;  %459 = vrot.lane.b32.xlu0 %v2335_v11, %s2219_s22 }
 0x14d   :  { %v155_v18 = vpop.permute.xlu0 %154 }
 0x14e   :  { %687 = vrot.lane.b32.xlu1 %v2357_v17, %s2219_s22  ;;  %611 = vrot.lane.b32.xlu0 %v2353_v16, %s2219_s22 }
 0x14f   :  { %2004 = vmatpush3.xpose.msk.msra.mxu1 %vm156_vm2, %v155_v18 }
 0x150   :  { %2008 = vmatprep.subr.mxu1 %v2214_v7 }
 0x152   :  { %2006 = vmatmul.mubr.msk.f32.vlgmr.msra.gmra.mxu1 %vm156_vm2, %v2327_v10 }
 0x153   :  { %2010 = vmatprep.mubr.msk.f32.mxu1 %vm2217_vm1, %v2214_v7 }
 0x1b4   :  { %v232_v19 = vpop.permute.xlu1 %231 }
 0x1b5   :  { %2009 = vmatpush3.xpose.msk.msra.mxu1 %vm156_vm2, %v232_v19 }
 0x1b6   :  { %2018 = vmatprep.subr.mxu1 %v2214_v7 }
 0x1b8   :  { %v384_v20 = vpop.permute.xlu1 %383  ;;  %2011 = vmatmul.mubr.msk.f32.vlgmr.msra.gmra.mxu1 %vm156_vm2, %v2344_v13  ;;  %v308_v21 = vpop.permute.xlu0 %307 }
 0x1b9   :  { %2014 = vmatpush3.xpose.msk.msra.mxu0 %vm156_vm2, %v308_v21  ;;  %2019 = vmatpush3.xpose.msk.msra.mxu1 %vm156_vm2, %v384_v20 }
 0x1ba   :  { %2020 = vmatprep.mubr.msk.f32.mxu1 %vm2217_vm1, %v2214_v7  ;;  %2023 = vmatprep.subr.mxu0 %v2214_v7 }
 0x1bb   :  { %2028 = vmatprep.subr.mxu1 %v2214_v7 }
 0x1bc   :  { %v536_v22 = vpop.permute.xlu1 %535  ;;  %2016 = vmatmul.mubr.msk.f32.vlgmr.msra.gmra.mxu0 %vm156_vm2, %v2347_v14  ;;  %2021 = vmatmul.mubr.msk.f32.vlgmr.msra.gmra.mxu1 %vm156_vm2, %v2342_v12  ;;  %v460_v23 = vpop.permute.xlu0 %459 }
 0x1bd   :  { %2024 = vmatpush3.xpose.msk.msra.mxu0 %vm156_vm2, %v460_v23  ;;  %2029 = vmatpush3.xpose.msk.msra.mxu1 %vm156_vm2, %v536_v22 }
 0x1be   :  { %2025 = vmatprep.mubr.msk.f32.mxu0 %vm2217_vm1, %v2214_v7  ;;  %2030 = vmatprep.mubr.msk.f32.mxu1 %vm2217_vm1, %v2214_v7 }
 0x1bf   :  { %2033 = vmatprep.subr.mxu0 %v2214_v7  ;;  %2038 = vmatprep.subr.mxu1 %v2214_v7 }
 0x1c0   :  { %v688_v24 = vpop.permute.xlu1 %687  ;;  %2026 = vmatmul.mubr.msk.f32.vlgmr.msra.gmra.mxu0 %vm156_vm2, %v2335_v11  ;;  %2031 = vmatmul.mubr.msk.f32.vlgmr.msra.gmra.mxu1 %vm156_vm2, %v2351_v15  ;;  %v612_v25 = vpop.permute.xlu0 %611 }
 0x1c1   :  { %2034 = vmatpush3.xpose.msk.msra.mxu0 %vm156_vm2, %v612_v25  ;;  %2039 = vmatpush3.xpose.msk.msra.mxu1 %vm156_vm2, %v688_v24 }
 0x1c2   :  { %2035 = vmatprep.mubr.msk.f32.mxu0 %vm2217_vm1, %v2214_v7  ;;  %2040 = vmatprep.mubr.msk.f32.mxu1 %vm2217_vm1, %v2214_v7 }
 0x1c3   :  { %2043 = vmatprep.subr.mxu0 %v2214_v7  ;;  %2048 = vmatprep.subr.mxu1 %v2214_v7 }
 0x1c4   :  { %2036 = vmatmul.mubr.msk.f32.vlgmr.msra.gmra.mxu0 %vm156_vm2, %v2353_v16  ;;  %2041 = vmatmul.mubr.msk.f32.vlgmr.msra.gmra.mxu1 %vm156_vm2, %v2357_v17 }
 0x1c5   :  { %2045 = vmatprep.mubr.msk.f32.mxu0 %vm2217_vm1, %v2214_v7  ;;  %2050 = vmatprep.mubr.msk.f32.mxu1 %vm2217_vm1, %v2214_v7 }
 0x212   :  { %v227_v26 = vpop.f32.mrf.mxu1 }
 0x213   :  { %v763_v27 = vsel %vm156_vm2, %v227_v26, -inf }
 0x214   :  { %764 = vmax.xlane.f32.xlu0 %v763_v27  ;;  %v2007_v28 = vpop.f32.mrf.mxu1 }
 0x278   :  { %v303_v29 = vpop.f32.mrf.mxu1 }
 0x279   :  { %v766_v30 = vsel %vm156_vm2, %v303_v29, -inf }
 0x27a   :  { %767 = vmax.xlane.f32.xlu1 %v766_v30  ;;  %v2012_v31 = vpop.f32.mrf.mxu1 }
 0x27c   :  { %v379_v32 = vpop.f32.mrf.mxu0  ;;  %v455_v33 = vpop.f32.mrf.mxu1 }
 0x27d   :  { %v769_v34 = vsel %vm156_vm2, %v379_v32, -inf  ;;  %v772_v39 = vsel %vm156_vm2, %v455_v33, -inf }
 0x27e   :  { %v2022_v35 = vpop.f32.mrf.mxu1  ;;  %770 = vmax.xlane.f32.xlu0 %v769_v34  ;;  %v2017_v36 = vpop.f32.mrf.mxu0 }
 0x280   :  { %v531_v37 = vpop.f32.mrf.mxu0  ;;  %v607_v38 = vpop.f32.mrf.mxu1 }
 0x281   :  { %v775_v40 = vsel %vm156_vm2, %v531_v37, -inf  ;;  %v778_v45 = vsel %vm156_vm2, %v607_v38, -inf }
 0x282   :  { %v2032_v41 = vpop.f32.mrf.mxu1  ;;  %773 = vmax.xlane.f32.xlu0 %v772_v39  ;;  %776 = vmax.xlane.f32.xlu1 %v775_v40  ;;  %v2027_v42 = vpop.f32.mrf.mxu0 }
 0x284   :  { %v683_v43 = vpop.f32.mrf.mxu0  ;;  %v759_v44 = vpop.f32.mrf.mxu1 }
 0x285   :  { %v781_v46 = vsel %vm156_vm2, %v683_v43, -inf  ;;  %v784_v49 = vsel %vm156_vm2, %v759_v44, -inf }
 0x286   :  { %v2042_v47 = vpop.f32.mrf.mxu1  ;;  %779 = vmax.xlane.f32.xlu0 %v778_v45  ;;  %782 = vmax.xlane.f32.xlu1 %v781_v46  ;;  %v2037_v48 = vpop.f32.mrf.mxu0 }
 0x28a   :  { %785 = vmax.xlane.f32.xlu0 %v784_v49 }
 0x297   :  { %851 = vrot.lane.b32.xlu1 %v2327_v10, %s2220_s23 }
 0x29b   :  { %1003 = vrot.lane.b32.xlu1 %v2347_v14, %s2220_s23 }
 0x29d   :  { %v765_v50 = vpop.xlane.xlu0 %764 }
 0x29e   :  { %v787_v51 = vsub.f32 %v227_v26, %v765_v50 }
 0x29f   :  { %1079 = vrot.lane.b32.xlu1 %v2342_v12, %s2220_s23 }
 0x2a0   :  { %927 = vrot.lane.b32.xlu0 %v2344_v13, %s2220_s23  ;;  %v795_v52 = vmul.f32 1.442695, %v787_v51 }
 0x2a2   :  { %2152 = vpow2.f32 %v795_v52 }
 0x2a3   :  { %1231 = vrot.lane.b32.xlu1 %v2351_v15, %s2220_s23 }
 0x2a4   :  { %1155 = vrot.lane.b32.xlu0 %v2335_v11, %s2220_s23 }
 0x2af   :  { %v2429_v53 = vpop.eup %2152 }
 0x2b0   :  { %v811_v54 = vsel %vm156_vm2, %v2429_v53, 0.0 }
 0x2c7   :  { %812 = vadd.xlane.f32.xlu1 %v811_v54 }
 0x303   :  { %v768_v55 = vpop.xlane.xlu1 %767 }
 0x304   :  { %v788_v56 = vsub.f32 %v303_v29, %v768_v55 }
 0x306   :  { %v797_v57 = vmul.f32 1.442695, %v788_v56 }
 0x307   :  { %v771_v58 = vpop.xlane.xlu0 %770 }
 0x308   :  { %2154 = vpow2.f32 %v797_v57  ;;  %v789_v59 = vsub.f32 %v379_v32, %v771_v58 }
 0x30a   :  { %v799_v60 = vmul.f32 1.442695, %v789_v59 }
 0x30b   :  { %v777_v61 = vpop.xlane.xlu1 %776  ;;  %v774_v62 = vpop.xlane.xlu0 %773 }
 0x30c   :  { %2156 = vpow2.f32 %v799_v60  ;;  %v791_v63 = vsub.f32 %v531_v37, %v777_v61  ;;  %v790_v0 = vsub.f32 %v455_v33, %v774_v62 }
 0x30e   :  { %v803_v1 = vmul.f32 1.442695, %v791_v63  ;;  %v801_v3 = vmul.f32 1.442695, %v790_v0  ;;  %v1494_v63 = vld [vmem:[%s2609_s3 + $0x18] sm:$0xff] }
 0x30f   :  { %v783_v4 = vpop.xlane.xlu1 %782  ;;  %v780_v6 = vpop.xlane.xlu0 %779 }
 0x310   :  { %2158 = vpow2.f32 %v803_v1  ;;  %v793_v8 = vsub.f32 %v683_v43, %v783_v4  ;;  %v792_v9 = vsub.f32 %v607_v38, %v780_v6  ;;  %v1492_v1 = vld [vmem:[%s2609_s3 + $0x8] sm:$0xff]  ;;  %v1491_v6 = vld [vmem:[%s2609_s3] sm:$0xff] }
 0x311   :  { %2160 = vpow2.f32 %v801_v3 }
 0x312   :  { %v807_v10 = vmul.f32 1.442695, %v793_v8  ;;  %v805_v11 = vmul.f32 1.442695, %v792_v9 }
 0x313   :  { %v852_v12 = vpop.permute.xlu1 %851  ;;  %v786_v13 = vpop.xlane.xlu0 %785 }
 0x314   :  { %2162 = vpow2.f32 %v807_v10  ;;  %v794_v14 = vsub.f32 %v759_v44, %v786_v13  ;;  %2044 = vmatpush3.msra.mxu0 %v852_v12 }
 0x315   :  { %v2155_v15 = vpop.eup %2154  ;;  %2164 = vpow2.f32 %v805_v11  ;;  %2053 = vmatprep.subr.mxu0 %v2214_v7 }
 0x316   :  { %v809_v18 = vmul.f32 1.442695, %v794_v14  ;;  %v814_v19 = vsel %vm156_vm2, %v2155_v15, 0.0 }
 0x317   :  { %815 = vadd.xlane.f32.xlu0 %v814_v19  ;;  %v928_v20 = vpop.permute.xlu0 %927  ;;  %v1004_v33 = vpop.permute.xlu1 %1003 }
 0x318   :  { %2166 = vpow2.f32 %v809_v18  ;;  %2049 = vmatpush3.msra.mxu1 %v928_v20 }
 0x319   :  { %v2157_v21 = vpop.eup %2156  ;;  %2058 = vmatprep.subr.mxu1 %v2214_v7 }
 0x31a   :  { %v817_v22 = vsel %vm156_vm2, %v2157_v21, 0.0 }
 0x31b   :  { %818 = vadd.xlane.f32.xlu1 %v817_v22  ;;  %v1080_v34 = vpop.permute.xlu1 %1079 }
 0x31d   :  { %v2159_v23 = vpop.eup %2158 }
 0x31e   :  { %v2161_v24 = vpop.eup %2160  ;;  %v823_v25 = vsel %vm156_vm2, %v2159_v23, 0.0 }
 0x31f   :  { %824 = vadd.xlane.f32.xlu1 %v823_v25  ;;  %v820_v26 = vsel %vm156_vm2, %v2161_v24, 0.0  ;;  %v1232_v35 = vpop.permute.xlu1 %1231 }
 0x320   :  { %821 = vadd.xlane.f32.xlu0 %v820_v26 }
 0x321   :  { %v2163_v27 = vpop.eup %2162 }
 0x322   :  { %v2439_v28 = vpop.eup %2164  ;;  %v829_v29 = vsel %vm156_vm2, %v2163_v27, 0.0 }
 0x323   :  { %830 = vadd.xlane.f32.xlu1 %v829_v29  ;;  %v826_v30 = vsel %vm156_vm2, %v2439_v28, 0.0 }
 0x324   :  { %827 = vadd.xlane.f32.xlu0 %v826_v30 }
 0x325   :  { %v2444_v31 = vpop.eup %2166 }
 0x326   :  { %v832_v32 = vsel %vm156_vm2, %v2444_v31, 0.0 }
 0x328   :  { %833 = vadd.xlane.f32.xlu0 %v832_v32 }
 0x334   :  { %1383 = vrot.lane.b32.xlu1 %v2357_v17, %s2220_s23  ;;  %v1156_v17 = vpop.permute.xlu0 %1155 }
 0x33e   :  { %1307 = vrot.lane.b32.xlu0 %v2353_v16, %s2220_s23 }
 0x350   :  { %v813_v36 = vpop.xlane.xlu1 %812 }
 0x351   :  { %2168 = vrcp.f32 %v813_v36 }
 0x35e   :  { %v2169_v37 = vpop.eup %2168 }
 0x35f   :  { %v843_v38 = vmul.f32 %v2169_v37, %v2429_v53 }
 0x361   :  { %2046 = vmatmul.mubr.msk.f32.vlgmr.msra.gmra.mxu0 %vm156_vm2, %v843_v38 }
 0x362   :  { %2054 = vmatpush3.msra.mxu0 %v1004_v33  ;;  %2055 = vmatprep.mubr.msk.f32.mxu0 %vm2217_vm1, %v2214_v7  ;;  %v1913_v33 = vld [vmem:[%s2610_s4] ss:$0 sm:$0xff] }
 0x363   :  { %2063 = vmatprep.subr.mxu0 %v2214_v7 }
 0x3a0   :  { %v816_v39 = vpop.xlane.xlu0 %815 }
 0x3a1   :  { %2170 = vrcp.f32 %v816_v39 }
 0x3a4   :  { %v819_v16 = vpop.xlane.xlu1 %818 }
 0x3a5   :  { %2172 = vrcp.f32 %v819_v16 }
 0x3a8   :  { %v825_v40 = vpop.xlane.xlu1 %824 }
 0x3a9   :  { %2174 = vrcp.f32 %v825_v40  ;;  %v822_v41 = vpop.xlane.xlu0 %821 }
 0x3aa   :  { %2176 = vrcp.f32 %v822_v41 }
 0x3ac   :  { %v831_v42 = vpop.xlane.xlu1 %830 }
 0x3ad   :  { %2178 = vrcp.f32 %v831_v42  ;;  %v828_v43 = vpop.xlane.xlu0 %827 }
 0x3ae   :  { %v2171_v44 = vpop.eup %2170  ;;  %2180 = vrcp.f32 %v828_v43 }
 0x3af   :  { %v844_v45 = vmul.f32 %v2171_v44, %v2155_v15 }
 0x3b0   :  { %v1384_v58 = vpop.permute.xlu1 %1383 }
 0x3b1   :  { %v834_v46 = vpop.xlane.xlu0 %833  ;;  %2051 = vmatmul.mubr.msk.f32.vlgmr.msra.gmra.mxu1 %vm156_vm2, %v844_v45 }
 0x3b2   :  { %v2173_v47 = vpop.eup %2172  ;;  %2182 = vrcp.f32 %v834_v46  ;;  %2059 = vmatpush3.msra.mxu1 %v1080_v34  ;;  %2060 = vmatprep.mubr.msk.f32.mxu1 %vm2217_vm1, %v2214_v7 }
 0x3b3   :  { %v845_v48 = vmul.f32 %v2173_v47, %v2157_v21  ;;  %2068 = vmatprep.subr.mxu1 %v2214_v7 }
 0x3b5   :  { %2056 = vmatmul.mubr.msk.f32.vlgmr.msra.gmra.mxu0 %vm156_vm2, %v845_v48  ;;  %v1308_v53 = vpop.permute.xlu0 %1307  ;;  %v1633_v48 = vld [vmem:[%s2611_s5 + $0x18] sm:$0xff] }
 0x3b6   :  { %v2175_v49 = vpop.eup %2174  ;;  %2064 = vmatpush3.msra.mxu0 %v1156_v17  ;;  %2065 = vmatprep.mubr.msk.f32.mxu0 %vm2217_vm1, %v2214_v7 }
 0x3b7   :  { %v2177_v50 = vpop.eup %2176  ;;  %2073 = vmatprep.subr.mxu0 %v2214_v7  ;;  %v847_v51 = vmul.f32 %v2175_v49, %v2159_v23  ;;  %v1632_v49 = vld [vmem:[%s2611_s5 + $0x10] sm:$0xff] }
 0x3b8   :  { %v846_v52 = vmul.f32 %v2177_v50, %v2161_v24  ;;  %v1631_v50 = vld [vmem:[%s2611_s5 + $0x8] sm:$0xff] }
 0x3b9   :  { %2066 = vmatmul.mubr.msk.f32.vlgmr.msra.gmra.mxu0 %vm156_vm2, %v847_v51  ;;  %v1630_v51 = vld [vmem:[%s2611_s5] sm:$0xff] }
 0x3ba   :  { %v2179_v54 = vpop.eup %2178  ;;  %2061 = vmatmul.mubr.msk.f32.vlgmr.msra.gmra.mxu1 %vm156_vm2, %v846_v52  ;;  %2074 = vmatpush3.msra.mxu0 %v1308_v53  ;;  %v1739_v52 = vld [vmem:[%s2613_s7 + $0x78] sm:$0xff]  ;;  %v1738_v53 = vld [vmem:[%s2613_s7 + $0x70] sm:$0xff] }
 0x3bb   :  { %v2181_v55 = vpop.eup %2180  ;;  %2069 = vmatpush3.msra.mxu1 %v1232_v35  ;;  %2070 = vmatprep.mubr.msk.f32.mxu1 %vm2217_vm1, %v2214_v7  ;;  %v849_v56 = vmul.f32 %v2179_v54, %v2163_v27  ;;  %v1737_v54 = vld [vmem:[%s2613_s7 + $0x68] sm:$0xff] }
 0x3bc   :  { %2075 = vmatprep.mubr.msk.f32.mxu0 %vm2217_vm1, %v2214_v7  ;;  %2078 = vmatprep.subr.mxu1 %v2214_v7  ;;  %v848_v57 = vmul.f32 %v2181_v55, %v2439_v28  ;;  %v1736_v55 = vld [vmem:[%s2613_s7 + $0x60] sm:$0xff] }
 0x3bd   :  { %2076 = vmatmul.mubr.msk.f32.vlgmr.msra.gmra.mxu0 %vm156_vm2, %v849_v56  ;;  %2105 = vmatprep.subr.mxu0 %v1739_v52  ;;  %v1735_v56 = vld [vmem:[%s2613_s7 + $0x58] sm:$0xff] }
 0x3be   :  { %2071 = vmatmul.mubr.msk.f32.vlgmr.msra.gmra.mxu1 %vm156_vm2, %v848_v57  ;;  %2106 = vmatpush3.msra.mxu0 %v1739_v52  ;;  %v1734_v57 = vld [vmem:[%s2613_s7 + $0x50] sm:$0xff] }
 0x3bf   :  { %v2183_v59 = vpop.eup %2182  ;;  %2079 = vmatpush3.msra.mxu1 %v1384_v58  ;;  %2080 = vmatprep.mubr.msk.f32.mxu1 %vm2217_vm1, %v2214_v7  ;;  %v1493_v7 = vld [vmem:[%s2609_s3 + $0x10] sm:$0xff]  ;;  %v1733_v58 = vld [vmem:[%s2613_s7 + $0x48] sm:$0xff] }
 0x3c0   :  { %v850_v60 = vmul.f32 %v2183_v59, %v2444_v31  ;;  %2083 = vmatprep.subr.mxu1 %v1494_v63  ;;  %2107 = vmatprep.subr.mxu0 %v1738_v53  ;;  %v1732_v59 = vld [vmem:[%s2613_s7 + $0x40] sm:$0xff] }
 0x3c1   :  { %2108 = vmatpush3.msra.mxu0 %v1738_v53  ;;  %v1922_v53 = vld [vmem:[%s2617_s11] ss:$0 sm:$0xff] }
 0x3c2   :  { %2081 = vmatmul.mubr.msk.f32.vlgmr.msra.gmra.mxu1 %vm156_vm2, %v850_v60  ;;  %2109 = vmatprep.subr.mxu0 %v1737_v54  ;;  %v1731_v60 = vld [vmem:[%s2613_s7 + $0x38] sm:$0xff] }
 0x3c3   :  { %2084 = vmatpush3.msra.mxu1 %v1494_v63  ;;  %2110 = vmatpush3.msra.mxu0 %v1737_v54  ;;  %v1728_v63 = vld [vmem:[%s2613_s7 + $0x20] sm:$0xff] }
 0x3c4   :  { %2085 = vmatprep.subr.mxu1 %v1493_v7  ;;  %2111 = vmatprep.subr.mxu0 %v1736_v55 }
 0x3c5   :  { %2086 = vmatpush3.msra.mxu1 %v1493_v7  ;;  %2112 = vmatpush3.msra.mxu0 %v1736_v55 }
 0x3c6   :  { %2087 = vmatprep.subr.mxu1 %v1492_v1  ;;  %2113 = vmatprep.subr.mxu0 %v1735_v56 }
 0x3c7   :  { %2088 = vmatpush3.msra.mxu1 %v1492_v1  ;;  %2114 = vmatpush3.msra.mxu0 %v1735_v56  ;;  %v1923_v56 = vld [vmem:[%s2618_s12] ss:$0 sm:$0xff] }
 0x3c8   :  { %2089 = vmatprep.subr.mxu1 %v1491_v6  ;;  %2115 = vmatprep.subr.mxu0 %v1734_v57 }
 0x3c9   :  { %2090 = vmatpush3.msra.mxu1 %v1491_v6  ;;  %2116 = vmatpush3.msra.mxu0 %v1734_v57 }
 0x3ca   :  { %2094 = vmatprep.subr.mxu1 %v1633_v48  ;;  %2117 = vmatprep.subr.mxu0 %v1733_v58 }
 0x3cb   :  { %2118 = vmatpush3.msra.mxu0 %v1733_v58 }
 0x3cc   :  { %2119 = vmatprep.subr.mxu0 %v1732_v59 }
 0x3cd   :  { %2120 = vmatpush3.msra.mxu0 %v1732_v59 }
 0x3ce   :  { %2121 = vmatprep.subr.mxu0 %v1731_v60 }
 0x3cf   :  { %2122 = vmatpush3.msra.mxu0 %v1731_v60 }
 0x421   :  { %v923_v61 = vpop.f32.mrf.mxu0 }
 0x423   :  { %v2047_v62 = vpop.f32.mrf.mxu0 }
 0x424   :  { %v1729_v62 = vld [vmem:[%s2613_s7 + $0x28] sm:$0xff] }
 0x471   :  { %v999_v0 = vpop.f32.mrf.mxu1 }
 0x472   :  { %1460 = vrot.lane.b32.xlu0 %v999_v0, %s2221_s26 }
 0x473   :  { %v2052_v3 = vpop.f32.mrf.mxu1 }
 0x475   :  { %v1075_v4 = vpop.f32.mrf.mxu0 }
 0x476   :  { %1464 = vrot.lane.b32.xlu1 %v1075_v4, %s2222_s14 }
 0x477   :  { %v2057_v8 = vpop.f32.mrf.mxu0 }
 0x479   :  { %v1227_v9 = vpop.f32.mrf.mxu0 }
 0x47a   :  { %v1151_v10 = vpop.f32.mrf.mxu1 }
 0x47b   :  { %1468 = vrot.lane.b32.xlu1 %v1151_v10, %s2223_s17  ;;  %v2067_v11 = vpop.f32.mrf.mxu0 }
 0x47c   :  { %v2062_v12 = vpop.f32.mrf.mxu1  ;;  %v1917_v11 = vld [vmem:[%s2616_s10] ss:$0 sm:$0xff] }
 0x47d   :  { %v1379_v13 = vpop.f32.mrf.mxu0 }
 0x47e   :  { %v1303_v14 = vpop.f32.mrf.mxu1 }
 0x47f   :  { %1477 = vrot.lane.b32.xlu0 %v1303_v14, %s2221_s26  ;;  %v2077_v15 = vpop.f32.mrf.mxu0 }
 0x480   :  { %v2072_v18 = vpop.f32.mrf.mxu1 }
 0x482   :  { %v1455_v19 = vpop.f32.mrf.mxu1 }
 0x483   :  { %1485 = vrot.lane.b32.xlu1 %v1455_v19, %s2223_s17  ;;  %1481 = vrot.lane.b32.xlu0 %v1379_v13, %s2222_s14 }
 0x484   :  { %v2082_v20 = vpop.f32.mrf.mxu1 }
 0x485   :  { %v1727_v20 = vld [vmem:[%s2613_s7 + $0x18] sm:$0xff] }
 0x4e4   :  { %v1461_v22 = vpop.permute.xlu0 %1460 }
 0x4e5   :  { %v1471_v23 = vsel %vm156_vm2, %v923_v61, %v1461_v22  ;;  %v1730_v61 = vld [vmem:[%s2613_s7 + $0x30] sm:$0xff]  ;;  %v1725_v22 = vld [vmem:[%s2613_s7 + $0x8] sm:$0xff] }
 0x4e6   :  { %2123 = vmatprep.subr.mxu0 %v1730_v61 }
 0x4e7   :  { %2124 = vmatpush3.msra.mxu0 %v1730_v61 }
 0x4e8   :  { %v1465_v21 = vpop.permute.xlu1 %1464  ;;  %2125 = vmatprep.subr.mxu0 %v1729_v62 }
 0x4e9   :  { %v1473_v24 = vsel %vm1472_vm3, %v1471_v23, %v1465_v21  ;;  %2126 = vmatpush3.msra.mxu0 %v1729_v62  ;;  %v1726_v21 = vld [vmem:[%s2613_s7 + $0x10] sm:$0xff]  ;;  %v1724_v23 = vld [vmem:[%s2613_s7] sm:$0xff] }
 0x4ea   :  { %2127 = vmatprep.subr.mxu0 %v1728_v63 }
 0x4eb   :  { %2128 = vmatpush3.msra.mxu0 %v1728_v63 }
 0x4ec   :  { %2129 = vmatprep.subr.mxu0 %v1727_v20 }
 0x4ed   :  { %v1469_v25 = vpop.permute.xlu1 %1468  ;;  %2130 = vmatpush3.msra.mxu0 %v1727_v20 }
 0x4ee   :  { %v1475_v26 = vsel %vm1474_vm4, %v1473_v24, %v1469_v25  ;;  %2131 = vmatprep.subr.mxu0 %v1726_v21  ;;  %v1918_v24 = vld [vmem:[%s2612_s6] ss:$0 sm:$0xff] }
 0x4ef   :  { %2091 = vmatprep.mubr.msk.f32.mxu1 %vm58_vm0, %v1475_v26  ;;  %2132 = vmatpush3.msra.mxu0 %v1726_v21 }
 0x4f0   :  { %2133 = vmatprep.subr.mxu0 %v1725_v22 }
 0x4f1   :  { %v1478_v27 = vpop.permute.xlu0 %1477  ;;  %2134 = vmatpush3.msra.mxu0 %v1725_v22 }
 0x4f2   :  { %v1488_v28 = vsel %vm156_vm2, %v1227_v9, %v1478_v27  ;;  %v1916_v9 = vld [vmem:[%s2615_s9] ss:$0 sm:$0xff]  ;;  %2135 = vmatprep.subr.mxu0 %v1724_v23 }
 0x4f3   :  { %2136 = vmatpush3.msra.mxu0 %v1724_v23 }
 0x4f5   :  { %v1486_v29 = vpop.permute.xlu1 %1485  ;;  %v1482_v30 = vpop.permute.xlu0 %1481 }
 0x4f6   :  { %v1489_v31 = vsel %vm1472_vm3, %v1488_v28, %v1482_v30 }
 0x4f7   :  { %v1490_v32 = vsel %vm1474_vm4, %v1489_v31, %v1486_v29  ;;  %v1921_v31 = vld [vmem:[%s2614_s8] ss:$0 sm:$0xff] }
 0x4f8   :  { %2092 = vmatmul.mubr.msk.f32.vlgmr.msra.gmra.mxu1 %vm58_vm0, %v1490_v32 }
 0x4f9   :  { %2095 = vmatpush3.msra.mxu1 %v1633_v48 }
 0x4fa   :  { %2096 = vmatprep.subr.mxu1 %v1632_v49 }
 0x4fb   :  { %2097 = vmatpush3.msra.mxu1 %v1632_v49 }
 0x4fc   :  { %2098 = vmatprep.subr.mxu1 %v1631_v50 }
 0x4fd   :  { %2099 = vmatpush3.msra.mxu1 %v1631_v50 }
 0x4fe   :  { %2100 = vmatprep.subr.mxu1 %v1630_v51 }
 0x4ff   :  { %2101 = vmatpush3.msra.mxu1 %v1630_v51 }
 0x5b8   :  { %v2093_v34 = vpop.f32.mrf.mxu1 }
 0x5b9   :  { %v1580_v35 = vadd.f32 %v2093_v34, %v1913_v33 }
 0x5ba   :  { %v1574_v36 = vpop.f32.mrf.mxu1 }
 0x5bb   :  { %v1575_v37 = vadd.f32 %v1913_v33, %v1574_v36  ;;  %v1584_v38 = vadd.f32 %v1580_v35, %v2318_v5 }
 0x5bd   :  { %v1590_v17 = vsel %vm58_vm0, %v1584_v38, 0.0  ;;  %v1583_v39 = vadd.f32 %v1575_v37, %v2305_v2 }
 0x5be   :  { %1591 = vadd.xlane.f32.xlu1 %v1590_v17 }
 0x5bf   :  { %v1587_v16 = vsel %vm58_vm0, %v1583_v39, 0.0 }
 0x5c0   :  { %1588 = vadd.xlane.f32.xlu0 %v1587_v16 }
 0x647   :  { %v1592_v40 = vpop.xlane.xlu1 %1591 }
 0x648   :  { %v1595_v41 = vmul.f32 0.03125, %v1592_v40 }
 0x649   :  { %v1589_v42 = vpop.xlane.xlu0 %1588 }
 0x64a   :  { %v1594_v43 = vmul.f32 0.03125, %v1589_v42  ;;  %v2504_v44 = vsub.f32 %v1584_v38, %v1595_v41 }
 0x64c   :  { %v2506_v45 = vsub.f32 %v1583_v39, %v1594_v43  ;;  %v1599_v2 = vmul.f32 %v2504_v44, %v2504_v44 }
 0x64e   :  { %v1598_v46 = vmul.f32 %v2506_v45, %v2506_v45  ;;  %v1603_v47 = vsel %vm58_vm0, %v1599_v2, 0.0 }
 0x650   :  { %v1600_v5 = vsel %vm58_vm0, %v1598_v46, 0.0 }
 0x651   :  { %1601 = vadd.xlane.f32.xlu0 %v1600_v5 }
 0x655   :  { %1604 = vadd.xlane.f32.xlu0 %v1603_v47 }
 0x6da   :  { %v1602_v0 = vpop.xlane.xlu0 %1601 }
 0x6db   :  { %v1606_v7 = vmul.f32 0.03125, %v1602_v0 }
 0x6dd   :  { %v1608_v1 = vadd.f32 1e-05, %v1606_v7 }
 0x6de   :  { %v1605_v3 = vpop.xlane.xlu0 %1604 }
 0x6df   :  { %2184 = vrsqrt.f32 %v1608_v1  ;;  %v1607_v4 = vmul.f32 0.03125, %v1605_v3 }
 0x6e1   :  { %v1609_v6 = vadd.f32 1e-05, %v1607_v4 }
 0x6e3   :  { %2186 = vrsqrt.f32 %v1609_v6 }
 0x6ec   :  { %v2185_v8 = vpop.eup %2184 }
 0x6ed   :  { %v1612_v10 = vmul.f32 %v2185_v8, %v2506_v45 }
 0x6ef   :  { %v1620_v12 = vmul.f32 %v1916_v9, %v1612_v10 }
 0x6f0   :  { %v2187_v13 = vpop.eup %2186 }
 0x6f1   :  { %v1613_v14 = vmul.f32 %v2187_v13, %v2504_v44  ;;  %v1628_v15 = vadd.f32 %v1917_v11, %v1620_v12 }
 0x6f3   :  { %v1621_v18 = vmul.f32 %v1916_v9, %v1613_v14  ;;  %2102 = vmatprep.mubr.msk.f32.mxu1 %vm58_vm0, %v1628_v15 }
 0x6f5   :  { %v1629_v19 = vadd.f32 %v1917_v11, %v1621_v18 }
 0x6f7   :  { %2103 = vmatmul.mubr.msk.f32.vlgmr.msra.gmra.mxu1 %vm58_vm0, %v1629_v19 }
 0x7b7   :  { %v2104_v25 = vpop.f32.mrf.mxu1 }
 0x7b8   :  { %v1719_v26 = vadd.f32 %v2104_v25, %v1918_v24 }
 0x7b9   :  { %v1713_v27 = vpop.f32.mrf.mxu1 }
 0x7ba   :  { %v1714_v28 = vadd.f32 %v1918_v24, %v1713_v27  ;;  %v1723_v30 = vmax.f32 %v1719_v26, 0.0 }
 0x7bc   :  { %v1722_v29 = vmax.f32 %v1714_v28, 0.0 }
 0x7be   :  { %2137 = vmatprep.mubr.f32.mxu0 %v1722_v29 }
 0x7bf   :  { %2138 = vmatmul.mubr.f32.vlgmr.msra.gmra.mxu0 %v1723_v30 }
 0x87f   :  { %v2139_v32 = vpop.f32.mrf.mxu0 }
 0x880   :  { %v1819_v33 = vadd.f32 %v2139_v32, %v1921_v31 }
 0x881   :  { %v1813_v34 = vpop.f32.mrf.mxu0 }
 0x882   :  { %v1814_v35 = vadd.f32 %v1921_v31, %v1813_v34  ;;  %v1823_v36 = vadd.f32 %v1819_v33, %v1629_v19 }
 0x884   :  { %v1829_v37 = vsel %vm58_vm0, %v1823_v36, 0.0  ;;  %v1822_v38 = vadd.f32 %v1814_v35, %v1628_v15 }
 0x885   :  { %1830 = vadd.xlane.f32.xlu0 %v1829_v37 }
 0x886   :  { %v1826_v17 = vsel %vm58_vm0, %v1822_v38, 0.0 }
 0x887   :  { %1827 = vadd.xlane.f32.xlu1 %v1826_v17 }
 0x90e   :  { %v1831_v39 = vpop.xlane.xlu0 %1830 }
 0x90f   :  { %v1833_v16 = vmul.f32 0.03125, %v1831_v39 }
 0x910   :  { %v1828_v40 = vpop.xlane.xlu1 %1827 }
 0x911   :  { %v1835_v41 = vsub.f32 %v1823_v36, %v1833_v16  ;;  %v1832_v42 = vmul.f32 0.03125, %v1828_v40 }
 0x913   :  { %v1834_v43 = vsub.f32 %v1822_v38, %v1832_v42  ;;  %v1837_v44 = vmul.f32 %v1835_v41, %v1835_v41 }
 0x915   :  { %v1841_v45 = vsel %vm58_vm0, %v1837_v44, 0.0  ;;  %v1836_v46 = vmul.f32 %v1834_v43, %v1834_v43 }
 0x916   :  { %1842 = vadd.xlane.f32.xlu0 %v1841_v45 }
 0x917   :  { %v1838_v5 = vsel %vm58_vm0, %v1836_v46, 0.0 }
 0x918   :  { %1839 = vadd.xlane.f32.xlu1 %v1838_v5 }
 0x99f   :  { %v1843_v2 = vpop.xlane.xlu0 %1842 }
 0x9a0   :  { %v1845_v47 = vmul.f32 0.03125, %v1843_v2 }
 0x9a1   :  { %v1840_v48 = vpop.xlane.xlu1 %1839 }
 0x9a2   :  { %v1847_v49 = vadd.f32 1e-05, %v1845_v47  ;;  %v1844_v50 = vmul.f32 0.03125, %v1840_v48 }
 0x9a4   :  { %2188 = vrsqrt.f32 %v1847_v49  ;;  %v1846_v51 = vadd.f32 1e-05, %v1844_v50 }
 0x9a6   :  { %2190 = vrsqrt.f32 %v1846_v51 }
 0x9b1   :  { %v2189_v52 = vpop.eup %2188 }
 0x9b2   :  { %v1851_v54 = vmul.f32 %v2189_v52, %v1835_v41 }
 0x9b3   :  { %v2191_v55 = vpop.eup %2190 }
 0x9b4   :  { %v1850_v57 = vmul.f32 %v2191_v55, %v1834_v43  ;;  %v1859_v58 = vmul.f32 %v1922_v53, %v1851_v54 }
 0x9b6   :  { %v1858_v59 = vmul.f32 %v1922_v53, %v1850_v57  ;;  %v1867_v60 = vadd.f32 %v1923_v56, %v1859_v58 }
 0x9b8   :  { %v1866_v61 = vadd.f32 %v1923_v56, %v1858_v59  ;;  %1869 = vst.msk [vmem:[#allocation2 + $0x8] sm:$0xff] %vm58_vm0, %v1867_v60 }
 0x9ba   :  { %1868 = vst.msk [vmem:[#allocation2] sm:$0xff] %vm58_vm0, %v1866_v61 }
 0x9bb   :  { %2203 = shalt.err (!%p2200_p4)
}
 0x9bc   :  { %s2225_s11 = smov 128  }
 0x9bd   :  { %1881 = dma.vmem_to_hbm [thread:$0]  %s1876_s0, 256, %s2619_s13, [#allocation3], %s2225_s11, %s2225_s11, %s2221_s26  }
 0x9be   :  { %2212 = dma.done.wait [#allocation3], 256  }
 0x9bf   :  { %2213 = vsyncadd [#allocation3], 4294967040 }
 0x9c0   :  { %1885 = vsyncpa [#allocation3], 1 }

</bundles_post_ra>
